<compile_context>
chip_gen: v7x
topology: tpu7x:2x2x1
jax: 0.10.0
libtpu: 0.0.40
codegen_flags: <defaults>
</compile_context>

<pallas_src>
import functools

import jax
import jax.numpy as jnp
from jax.experimental import pallas as pl


# ----------------------------------------------------------------------------
# Activation map (only used by the 'concat' combine branch, as in the reference)
# ----------------------------------------------------------------------------
def _apply_act(name, x):
    if name == "relu":
        return jax.nn.relu(x)
    if name == "tanh":
        return jnp.tanh(x)
    if name == "sigmoid":
        return jax.nn.sigmoid(x)
    if name in ("linear", "identity"):
        return x
    # TODO(synk): act_map in the reference repo has more entries; default relu.
    return jax.nn.relu(x)


# ----------------------------------------------------------------------------
# Fused forward kernel factory.  DAG structure (layers, n_steps, indices,
# combine type) is static, so all loops are unrolled at trace time.
# ----------------------------------------------------------------------------
def _make_dag_forward_kernel(layers, n_steps, indices, concat_type, act_name,
                             matmul_dtype):
    def kernel(*refs):
        adj_ref, x_ref = refs[0], refs[1]
        cell_refs = refs[2:2 + 6 * layers]
        clf_w_ref = refs[2 + 6 * layers]
        clf_b_ref = refs[3 + 6 * layers]
        o_ref = refs[4 + 6 * layers]

        def mm(a, b):
            # MXU matmul; optionally bf16 inputs (v6e/v7x) with f32 accumulation.
            return jnp.dot(a.astype(matmul_dtype), b.astype(matmul_dtype),
                           preferred_element_type=jnp.float32)

        adj = adj_ref[...].astype(jnp.float32)
        s0 = x_ref[...].astype(jnp.float32)
        s1 = s0

        for c in range(layers):
            p0w, p0b, p1w, p1b, gw, gb = cell_refs[6 * c:6 * c + 6]
            # biases pre-broadcast to (num_nodes, n) -> pure VPU adds here
            t0 = mm(s0, p0w[...]) + p0b[...]
            t1 = mm(s1, p1w[...]) + p1b[...]
            states = [t0, t1]
            for i in range(n_steps):
                h = states[indices[i]]
                w_i = gw[i]          # static index: zero-cost slice of stacked weights
                b_i = gb[i]
                k_dim, n_dim = w_i.shape
                # GCN step  A_hat @ (h @ W) + b ; pick the matmul order with
                # fewer MXU flops when hidden_dim != out_dim.
                if n_dim <= k_dim:
                    s = mm(adj, mm(h, w_i)) + b_i
                else:
                    s = mm(mm(adj, h), w_i) + b_i
                states.append(s)

            if concat_type == "concat":
                new_s1 = _apply_act(act_name, jnp.concatenate(states[2:], axis=1))
            else:
                # reproduce the reference exactly: tmp starts at states[2] and
                # the loop also starts at index 2 -> states[2] contributes twice
                tmp = states[2]
                for i in range(2, len(states)):
                    if concat_type == "add":
                        tmp = tmp + states[i]
                    elif concat_type == "product":
                        tmp = tmp * states[i]
                new_s1 = tmp
            s0, s1 = s1, new_s1

        logits = mm(s1, clf_w_ref[...]) + clf_b_ref[...]
        o_ref[...] = logits.astype(o_ref.dtype)

    return kernel


# ----------------------------------------------------------------------------
# Parameter construction (deterministic, synthetic)
# ----------------------------------------------------------------------------
def _glorot(key, shape):
    fan_in, fan_out = shape
    lim = (6.0 / (fan_in + fan_out)) ** 0.5
    return jax.random.uniform(key, shape, jnp.float32, -lim, lim)


def make_cell_params(key, his_dim, cur_dim, hidden_dim, out_dim, n_steps):
    keys = jax.random.split(key, 2 + n_steps)
    return {
        "pre0_w": _glorot(keys[0], (his_dim, hidden_dim)),
        "pre0_b": jnp.zeros((hidden_dim,), jnp.float32),
        "pre1_w": _glorot(keys[1], (cur_dim, hidden_dim)),
        "pre1_b": jnp.zeros((hidden_dim,), jnp.float32),
        "gnn_w": [_glorot(keys[2 + i], (hidden_dim, out_dim)) for i in range(n_steps)],
        "gnn_b": [jnp.zeros((out_dim,), jnp.float32) for _ in range(n_steps)],
    }


def make_daglayer_params(key, action, num_feat, num_classes, num_hidden, layers):
    # action = [idx0, 'gcn', idx1, 'gcn', ..., act, concat_type]
    cells_info = action[:-2]
    assert len(cells_info) % 2 == 0
    n_steps = len(cells_info) // 2
    indices = [cells_info[2 * i] for i in range(n_steps)]
    act_name = action[-2]
    concat_type = action[-1]

    his_dim, cur_dim, hidden_dim, out_dim = num_feat, num_feat, num_hidden, num_hidden
    keys = jax.random.split(key, layers + 1)
    cells = []
    for i in range(layers):
        cells.append(make_cell_params(keys[i], his_dim, cur_dim, hidden_dim,
                                      out_dim, n_steps))
        his_dim = cur_dim
        cur_dim = n_steps * out_dim if concat_type == "concat" else out_dim

    clf_w = _glorot(keys[layers], (cur_dim, num_classes))
    clf_b = jnp.zeros((num_classes,), jnp.float32)
    return {"cells": cells, "clf_w": clf_w, "clf_b": clf_b,
            "indices": indices, "concat": concat_type, "act": act_name,
            "steps": n_steps}


# ----------------------------------------------------------------------------
# Plain-JAX glue + the single fused pallas_call
# ----------------------------------------------------------------------------
def edge_index_to_norm_adj(edge_index, num_nodes):
    # dense GCN-normalized adjacency with self-loops: D^-1/2 (A + I) D^-1/2
    # TODO(synk): dynamic scatter has no clean Pallas equivalent at this scale;
    #             adjacency build stays in plain JAX.
    src, dst = edge_index[0], edge_index[1]
    adj = jnp.zeros((num_nodes, num_nodes), jnp.float32)
    adj = adj.at[dst, src].set(1.0)
    adj = adj + jnp.eye(num_nodes, dtype=jnp.float32)
    deg = adj.sum(axis=1)
    dinv = 1.0 / jnp.sqrt(jnp.maximum(deg, 1.0))
    return adj * dinv[:, None] * dinv[None, :]


def daglayer_forward(params, x, input_ids, attention_mask, edge_index, edge_attr,
                     matmul_dtype=jnp.float32):
    # input_ids / attention_mask are accepted but unused, exactly as in the
    # reference forward().  edge_attr is only consumed by edge-aware convs,
    # which are not reproducible here (see TODO above).
    del input_ids, attention_mask, edge_attr
    num_nodes = x.shape[0]
    adj = edge_index_to_norm_adj(edge_index, num_nodes)

    layers = len(params["cells"])
    n_steps = params["steps"]
    indices = tuple(int(i) for i in params["indices"])
    concat_type = params["concat"]
    act_name = params["act"]
    num_classes = params["clf_w"].shape[1]

    # Pack every operand of the fused kernel.  Per-step GNN weights are stacked
    # into one (n_steps, hidden, out) operand; biases are pre-broadcast to
    # (num_nodes, n) so the in-kernel bias add is a pure VPU op.
    inputs = [adj, x]
    for cell in params["cells"]:
        gw = jnp.stack(cell["gnn_w"], axis=0)                     # (steps, hid, out)
        gb = jnp.stack(cell["gnn_b"], axis=0)                     # (steps, out)
        inputs += [
            cell["pre0_w"],
            jnp.broadcast_to(cell["pre0_b"][None, :],
                             (num_nodes, cell["pre0_b"].shape[0])),
            cell["pre1_w"],
            jnp.broadcast_to(cell["pre1_b"][None, :],
                             (num_nodes, cell["pre1_b"].shape[0])),
            gw,
            jnp.broadcast_to(gb[:, None, :], (n_steps, num_nodes, gb.shape[-1])),
        ]
    inputs += [
        params["clf_w"],
        jnp.broadcast_to(params["clf_b"][None, :], (num_nodes, num_classes)),
    ]

    kernel = _make_dag_forward_kernel(layers, n_steps, indices, concat_type,
                                      act_name, matmul_dtype)

    # One fused pallas_call: no grid, every operand is a whole-array VMEM block
    # (block == full array, so the (8,128) divisibility rule does not apply);
    # only the final logits block (legal: equals the full output shape) ever
    # hits HBM.
    return pl.pallas_call(
        kernel,
        out_shape=jax.ShapeDtypeStruct((num_nodes, num_classes), x.dtype),
    )(*inputs)


# ----------------------------------------------------------------------------
# Pure-JAX reference (for correctness check)
# ----------------------------------------------------------------------------
def daglayer_forward_ref(params, x, edge_index):
    adj = edge_index_to_norm_adj(edge_index, x.shape[0])
    s0 = s1 = x
    for cell in params["cells"]:
        t0 = s0 @ cell["pre0_w"] + cell["pre0_b"]
        t1 = s1 @ cell["pre1_w"] + cell["pre1_b"]
        states = [t0, t1]
        for i in range(params["steps"]):
            h = states[params["indices"][i]]
            states.append(adj @ (h @ cell["gnn_w"][i]) + cell["gnn_b"][i])
        if params["concat"] == "concat":
            new_s1 = _apply_act(params["act"], jnp.concatenate(states[2:], axis=1))
        else:
            tmp = states[2]
            for i in range(2, len(states)):
                if params["concat"] == "add":
                    tmp = tmp + states[i]
                elif params["concat"] == "product":
                    tmp = tmp * states[i]
            new_s1 = tmp
        s0, s1 = s1, new_s1
    return s1 @ params["clf_w"] + params["clf_b"]


# ----------------------------------------------------------------------------
# Demo
# ----------------------------------------------------------------------------
if __name__ == "__main__":
    key = jax.random.PRNGKey(0)
    k_x, k_e, k_p, k_ids = jax.random.split(key, 4)

    num_nodes = 8
    num_feat = 16
    num_hidden = 32
    num_classes = 4
    layers = 2
    num_edges = 16
    seq_len = 8

    # action: two DAG steps, inputs taken from state 0 and state 1, 'add' combine
    action = [0, "gcn", 1, "gcn", "relu", "add"]

    x = jax.random.normal(k_x, (num_nodes, num_feat), jnp.float32)
    edge_index = jax.random.randint(k_e, (2, num_edges), 0, num_nodes, jnp.int32)
    edge_attr = jnp.ones((num_edges, 1), jnp.float32)
    input_ids = jax.random.randint(k_ids, (num_nodes, seq_len), 0, 100, jnp.int32)
    attention_mask = jnp.ones((num_nodes, seq_len), jnp.int32)

    params = make_daglayer_params(k_p, action, num_feat, num_classes,
                                  num_hidden, layers)

    # f32 MXU inputs keep exact parity with the plain-JAX reference; on v6e/v7x
    # pass matmul_dtype=jnp.bfloat16 for ~2x MXU throughput (f32 accumulation
    # and f32 epilogue are preserved either way).
    fwd = jax.jit(functools.partial(daglayer_forward, params))
    logits = fwd(x, input_ids, attention_mask, edge_index, edge_attr)
    jax.block_until_ready(logits)
    assert logits.shape == (num_nodes, num_classes)

    ref = daglayer_forward_ref(params, x, edge_index)
    assert jnp.allclose(logits, ref, rtol=1e-4, atol=1e-4), \
        "Pallas output mismatches plain-JAX reference"

    print("KERNEL_OK")
</pallas_src>

<mosaic_0001>
module attributes {stable_mosaic.version = 11 : i64} {
  func.func @kernel(%arg0: memref<8x8xf32, #tpu.memory_space<vmem>>, %arg1: memref<8x16xf32, #tpu.memory_space<vmem>>, %arg2: memref<16x32xf32, #tpu.memory_space<vmem>>, %arg3: memref<8x32xf32, #tpu.memory_space<vmem>>, %arg4: memref<16x32xf32, #tpu.memory_space<vmem>>, %arg5: memref<8x32xf32, #tpu.memory_space<vmem>>, %arg6: memref<2x32x32xf32, #tpu.memory_space<vmem>>, %arg7: memref<2x8x32xf32, #tpu.memory_space<vmem>>, %arg8: memref<16x32xf32, #tpu.memory_space<vmem>>, %arg9: memref<8x32xf32, #tpu.memory_space<vmem>>, %arg10: memref<32x32xf32, #tpu.memory_space<vmem>>, %arg11: memref<8x32xf32, #tpu.memory_space<vmem>>, %arg12: memref<2x32x32xf32, #tpu.memory_space<vmem>>, %arg13: memref<2x8x32xf32, #tpu.memory_space<vmem>>, %arg14: memref<32x4xf32, #tpu.memory_space<vmem>>, %arg15: memref<8x4xf32, #tpu.memory_space<vmem>>, %arg16: memref<8x4xf32, #tpu.memory_space<vmem>>) attributes {dimension_semantics = [], scalar_prefetch = 0 : i64, scratch_operands = 0 : i64, tpu.core_type = #tpu.core_type<tc>} {
    %c0 = arith.constant 0 : index
    %c0_0 = arith.constant 0 : index
    %0 = vector.load %arg0[%c0, %c0_0] : memref<8x8xf32, #tpu.memory_space<vmem>>, vector<8x8xf32>
    %c0_1 = arith.constant 0 : index
    %c0_2 = arith.constant 0 : index
    %1 = vector.load %arg1[%c0_1, %c0_2] : memref<8x16xf32, #tpu.memory_space<vmem>>, vector<8x16xf32>
    %c0_3 = arith.constant 0 : index
    %c0_4 = arith.constant 0 : index
    %2 = vector.load %arg2[%c0_3, %c0_4] : memref<16x32xf32, #tpu.memory_space<vmem>>, vector<16x32xf32>
    %cst = arith.constant dense<0.000000e+00> : vector<8x32xf32>
    %3 = tpu.matmul %1, %2, %cst {dimension_numbers = #tpu.dot_dimension_numbers<[1], [0], [0], [1], [0, 0, 1, 1], [], []>} : vector<8x16xf32>, vector<16x32xf32>, vector<8x32xf32> -> vector<8x32xf32>
    %c0_5 = arith.constant 0 : index
    %c0_6 = arith.constant 0 : index
    %4 = vector.load %arg3[%c0_5, %c0_6] : memref<8x32xf32, #tpu.memory_space<vmem>>, vector<8x32xf32>
    %5 = arith.addf %3, %4 : vector<8x32xf32>
    %c0_7 = arith.constant 0 : index
    %c0_8 = arith.constant 0 : index
    %6 = vector.load %arg4[%c0_7, %c0_8] : memref<16x32xf32, #tpu.memory_space<vmem>>, vector<16x32xf32>
    %cst_9 = arith.constant dense<0.000000e+00> : vector<8x32xf32>
    %7 = tpu.matmul %1, %6, %cst_9 {dimension_numbers = #tpu.dot_dimension_numbers<[1], [0], [0], [1], [0, 0, 1, 1], [], []>} : vector<8x16xf32>, vector<16x32xf32>, vector<8x32xf32> -> vector<8x32xf32>
    %c0_10 = arith.constant 0 : index
    %c0_11 = arith.constant 0 : index
    %8 = vector.load %arg5[%c0_10, %c0_11] : memref<8x32xf32, #tpu.memory_space<vmem>>, vector<8x32xf32>
    %9 = arith.addf %7, %8 : vector<8x32xf32>
    %c0_12 = arith.constant 0 : index
    %c0_13 = arith.constant 0 : index
    %c0_14 = arith.constant 0 : index
    %10 = vector.load %arg6[%c0_12, %c0_13, %c0_14] : memref<2x32x32xf32, #tpu.memory_space<vmem>>, vector<1x32x32xf32>
    %11 = vector.shape_cast %10 : vector<1x32x32xf32> to vector<32x32xf32>
    %c0_15 = arith.constant 0 : index
    %c0_16 = arith.constant 0 : index
    %c0_17 = arith.constant 0 : index
    %12 = vector.load %arg7[%c0_15, %c0_16, %c0_17] : memref<2x8x32xf32, #tpu.memory_space<vmem>>, vector<1x8x32xf32>
    %13 = vector.shape_cast %12 : vector<1x8x32xf32> to vector<8x32xf32>
    %cst_18 = arith.constant dense<0.000000e+00> : vector<8x32xf32>
    %14 = tpu.matmul %5, %11, %cst_18 {dimension_numbers = #tpu.dot_dimension_numbers<[1], [0], [0], [1], [0, 0, 1, 1], [], []>} : vector<8x32xf32>, vector<32x32xf32>, vector<8x32xf32> -> vector<8x32xf32>
    %cst_19 = arith.constant dense<0.000000e+00> : vector<8x32xf32>
    %15 = tpu.matmul %0, %14, %cst_19 {dimension_numbers = #tpu.dot_dimension_numbers<[1], [0], [0], [1], [0, 0, 1, 1], [], []>} : vector<8x8xf32>, vector<8x32xf32>, vector<8x32xf32> -> vector<8x32xf32>
    %16 = arith.addf %15, %13 : vector<8x32xf32>
    %c1 = arith.constant 1 : index
    %c0_20 = arith.constant 0 : index
    %c0_21 = arith.constant 0 : index
    %17 = vector.load %arg6[%c1, %c0_20, %c0_21] : memref<2x32x32xf32, #tpu.memory_space<vmem>>, vector<1x32x32xf32>
    %18 = vector.shape_cast %17 : vector<1x32x32xf32> to vector<32x32xf32>
    %c1_22 = arith.constant 1 : index
    %c0_23 = arith.constant 0 : index
    %c0_24 = arith.constant 0 : index
    %19 = vector.load %arg7[%c1_22, %c0_23, %c0_24] : memref<2x8x32xf32, #tpu.memory_space<vmem>>, vector<1x8x32xf32>
    %20 = vector.shape_cast %19 : vector<1x8x32xf32> to vector<8x32xf32>
    %cst_25 = arith.constant dense<0.000000e+00> : vector<8x32xf32>
    %21 = tpu.matmul %9, %18, %cst_25 {dimension_numbers = #tpu.dot_dimension_numbers<[1], [0], [0], [1], [0, 0, 1, 1], [], []>} : vector<8x32xf32>, vector<32x32xf32>, vector<8x32xf32> -> vector<8x32xf32>
    %cst_26 = arith.constant dense<0.000000e+00> : vector<8x32xf32>
    %22 = tpu.matmul %0, %21, %cst_26 {dimension_numbers = #tpu.dot_dimension_numbers<[1], [0], [0], [1], [0, 0, 1, 1], [], []>} : vector<8x8xf32>, vector<8x32xf32>, vector<8x32xf32> -> vector<8x32xf32>
    %23 = arith.addf %22, %20 : vector<8x32xf32>
    %24 = arith.addf %16, %16 : vector<8x32xf32>
    %25 = arith.addf %24, %23 : vector<8x32xf32>
    %c0_27 = arith.constant 0 : index
    %c0_28 = arith.constant 0 : index
    %26 = vector.load %arg8[%c0_27, %c0_28] : memref<16x32xf32, #tpu.memory_space<vmem>>, vector<16x32xf32>
    %cst_29 = arith.constant dense<0.000000e+00> : vector<8x32xf32>
    %27 = tpu.matmul %1, %26, %cst_29 {dimension_numbers = #tpu.dot_dimension_numbers<[1], [0], [0], [1], [0, 0, 1, 1], [], []>} : vector<8x16xf32>, vector<16x32xf32>, vector<8x32xf32> -> vector<8x32xf32>
    %c0_30 = arith.constant 0 : index
    %c0_31 = arith.constant 0 : index
    %28 = vector.load %arg9[%c0_30, %c0_31] : memref<8x32xf32, #tpu.memory_space<vmem>>, vector<8x32xf32>
    %29 = arith.addf %27, %28 : vector<8x32xf32>
    %c0_32 = arith.constant 0 : index
    %c0_33 = arith.constant 0 : index
    %30 = vector.load %arg10[%c0_32, %c0_33] : memref<32x32xf32, #tpu.memory_space<vmem>>, vector<32x32xf32>
    %cst_34 = arith.constant dense<0.000000e+00> : vector<8x32xf32>
    %31 = tpu.matmul %25, %30, %cst_34 {dimension_numbers = #tpu.dot_dimension_numbers<[1], [0], [0], [1], [0, 0, 1, 1], [], []>} : vector<8x32xf32>, vector<32x32xf32>, vector<8x32xf32> -> vector<8x32xf32>
    %c0_35 = arith.constant 0 : index
    %c0_36 = arith.constant 0 : index
    %32 = vector.load %arg11[%c0_35, %c0_36] : memref<8x32xf32, #tpu.memory_space<vmem>>, vector<8x32xf32>
    %33 = arith.addf %31, %32 : vector<8x32xf32>
    %c0_37 = arith.constant 0 : index
    %c0_38 = arith.constant 0 : index
    %c0_39 = arith.constant 0 : index
    %34 = vector.load %arg12[%c0_37, %c0_38, %c0_39] : memref<2x32x32xf32, #tpu.memory_space<vmem>>, vector<1x32x32xf32>
    %35 = vector.shape_cast %34 : vector<1x32x32xf32> to vector<32x32xf32>
    %c0_40 = arith.constant 0 : index
    %c0_41 = arith.constant 0 : index
    %c0_42 = arith.constant 0 : index
    %36 = vector.load %arg13[%c0_40, %c0_41, %c0_42] : memref<2x8x32xf32, #tpu.memory_space<vmem>>, vector<1x8x32xf32>
    %37 = vector.shape_cast %36 : vector<1x8x32xf32> to vector<8x32xf32>
    %cst_43 = arith.constant dense<0.000000e+00> : vector<8x32xf32>
    %38 = tpu.matmul %29, %35, %cst_43 {dimension_numbers = #tpu.dot_dimension_numbers<[1], [0], [0], [1], [0, 0, 1, 1], [], []>} : vector<8x32xf32>, vector<32x32xf32>, vector<8x32xf32> -> vector<8x32xf32>
    %cst_44 = arith.constant dense<0.000000e+00> : vector<8x32xf32>
    %39 = tpu.matmul %0, %38, %cst_44 {dimension_numbers = #tpu.dot_dimension_numbers<[1], [0], [0], [1], [0, 0, 1, 1], [], []>} : vector<8x8xf32>, vector<8x32xf32>, vector<8x32xf32> -> vector<8x32xf32>
    %40 = arith.addf %39, %37 : vector<8x32xf32>
    %c1_45 = arith.constant 1 : index
    %c0_46 = arith.constant 0 : index
    %c0_47 = arith.constant 0 : index
    %41 = vector.load %arg12[%c1_45, %c0_46, %c0_47] : memref<2x32x32xf32, #tpu.memory_space<vmem>>, vector<1x32x32xf32>
    %42 = vector.shape_cast %41 : vector<1x32x32xf32> to vector<32x32xf32>
    %c1_48 = arith.constant 1 : index
    %c0_49 = arith.constant 0 : index
    %c0_50 = arith.constant 0 : index
    %43 = vector.load %arg13[%c1_48, %c0_49, %c0_50] : memref<2x8x32xf32, #tpu.memory_space<vmem>>, vector<1x8x32xf32>
    %44 = vector.shape_cast %43 : vector<1x8x32xf32> to vector<8x32xf32>
    %cst_51 = arith.constant dense<0.000000e+00> : vector<8x32xf32>
    %45 = tpu.matmul %33, %42, %cst_51 {dimension_numbers = #tpu.dot_dimension_numbers<[1], [0], [0], [1], [0, 0, 1, 1], [], []>} : vector<8x32xf32>, vector<32x32xf32>, vector<8x32xf32> -> vector<8x32xf32>
    %cst_52 = arith.constant dense<0.000000e+00> : vector<8x32xf32>
    %46 = tpu.matmul %0, %45, %cst_52 {dimension_numbers = #tpu.dot_dimension_numbers<[1], [0], [0], [1], [0, 0, 1, 1], [], []>} : vector<8x8xf32>, vector<8x32xf32>, vector<8x32xf32> -> vector<8x32xf32>
    %47 = arith.addf %46, %44 : vector<8x32xf32>
    %48 = arith.addf %40, %40 : vector<8x32xf32>
    %49 = arith.addf %48, %47 : vector<8x32xf32>
    %c0_53 = arith.constant 0 : index
    %c0_54 = arith.constant 0 : index
    %50 = vector.load %arg14[%c0_53, %c0_54] : memref<32x4xf32, #tpu.memory_space<vmem>>, vector<32x4xf32>
    %cst_55 = arith.constant dense<0.000000e+00> : vector<8x4xf32>
    %51 = tpu.matmul %49, %50, %cst_55 {dimension_numbers = #tpu.dot_dimension_numbers<[1], [0], [0], [1], [0, 0, 1, 1], [], []>} : vector<8x32xf32>, vector<32x4xf32>, vector<8x4xf32> -> vector<8x4xf32>
    %c0_56 = arith.constant 0 : index
    %c0_57 = arith.constant 0 : index
    %52 = vector.load %arg15[%c0_56, %c0_57] : memref<8x4xf32, #tpu.memory_space<vmem>>, vector<8x4xf32>
    %53 = arith.addf %51, %52 : vector<8x4xf32>
    %c0_58 = arith.constant 0 : index
    %c0_59 = arith.constant 0 : index
    %54 = vector.load %arg16[%c0_58, %c0_59] : memref<8x4xf32, #tpu.memory_space<vmem>>, vector<8x4xf32>
    tpu.vector_store %arg16[%c0_58, %c0_59], %53 {strides = array<i32>} : memref<8x4xf32, #tpu.memory_space<vmem>>, vector<8x4xf32>,
    return
  }
}

</mosaic_0001>

<bundles_post_ra>
// kernel: daglayer_forward.1
= control target key start
LH: loop header
LB: loop body
LE: loop exit
PB: predicated region body
PF: predicated region fallthrough
CT: control target
= control target key end

     0   :  { %v1270_v0 = vmov 0.0|0.0   ;;  %vm1271_vm0 = vmmov 0   ;;  %v1272_v3 = vmov 0.0   ;;  %vm58_vm1 = vcmask 130048   ;;  %s1553_s2 = inlined_call_operand.vmem [shape: f32[16,32], index: 2, kind: input, shape index: {}]   ;;  %s1554_s6 = inlined_call_operand.vmem [shape: f32[2,32,32], index: 6, kind: input, shape index: {}]   ;;  %s1555_s1 = inlined_call_operand.vmem [shape: f32[8,16], index: 1, kind: input, shape index: {}]   ;;  %s1556_s4 = inlined_call_operand.vmem [shape: f32[16,32], index: 4, kind: input, shape index: {}]   ;;  %s1557_s3 = inlined_call_operand.vmem [shape: f32[8,32], index: 3, kind: input, shape index: {}, may-alias: {3,5,9,11}]   ;;  %s1558_s0 = inlined_call_operand.vmem [shape: f32[8,8], index: 0, kind: input, shape index: {}]   ;;  %s1559_s5 = inlined_call_operand.vmem [shape: f32[8,32], index: 5, kind: input, shape index: {}, may-alias: {3,5,9,11}]   ;;  %s1560_s10 = inlined_call_operand.vmem [shape: f32[32,32], index: 10, kind: input, shape index: {}]   ;;  %s1561_s8 = inlined_call_operand.vmem [shape: f32[16,32], index: 8, kind: input, shape index: {}]   ;;  %s1562_s12 = inlined_call_operand.vmem [shape: f32[2,32,32], index: 12, kind: input, shape index: {}]   ;;  %s1563_s7 = inlined_call_operand.vmem [shape: f32[2,8,32], index: 7, kind: input, shape index: {}, may-alias: {7,13}]   ;;  %s1564_s9 = inlined_call_operand.vmem [shape: f32[8,32], index: 9, kind: input, shape index: {}, may-alias: {3,5,9,11}]   ;;  %s1565_s11 = inlined_call_operand.vmem [shape: f32[8,32], index: 11, kind: input, shape index: {}, may-alias: {3,5,9,11}]   ;;  %s1566_s14 = inlined_call_operand.vmem [shape: f32[32,4], index: 14, kind: input, shape index: {}]   ;;  %s1567_s13 = inlined_call_operand.vmem [shape: f32[2,8,32], index: 13, kind: input, shape index: {}, may-alias: {7,13}]   ;;  %s1568_s15 = inlined_call_operand.vmem [shape: f32[8,4], index: 15, kind: input, shape index: {}]   ;;  %s1569_s16 = inlined_call_operand.vmem [shape: f32[8,4], index: 16, kind: output, shape index: {}]  }
   0x1   :  { %1571 = sst [smem:[#allocation2_spill]] %s1553_s2  ;;  %1222 = vmatprep.subr.bf16.mxu0 %v1270_v0  ;;  %1119 = vmatprep.mubr.msk.f32.mxu0 %vm1271_vm0, %v1272_v3  ;;  %v205_v5 = vld [vmem:[%s1554_s6] sm:$0xff]  ;;  %v206_v6 = vld [vmem:[%s1554_s6 + $0x8] sm:$0xff]  ;;  %v207_v9 = vld [vmem:[%s1554_s6 + $0x10] sm:$0xff]  ;;  %vm210_vm2 = vcmask 261120   ;;  %vm284_vm3 = vcmask 64512  }
   0x2   :  { %s1572_s23 = sld [smem:[#allocation2_spill]]  ;;  %1225 = vmatprep.subr.bf16.mxu1 %v1270_v0  ;;  %1126 = vmatprep.mubr.msk.f32.mxu1 %vm1271_vm0, %v1272_v3  ;;  %v1379_v7 = vld [vmem:[%s1555_s1] sm:$0xff]  ;;  %v1229_v8 = vpack.c.bf16 %v206_v6, %v205_v5  ;;  %v208_v10 = vld [vmem:[%s1554_s6 + $0x18] sm:$0xff]  ;;  %v133_v13 = vld [vmem:[%s1556_s4 + $0x8] sm:$0xff]  ;;  %vm1039_vm4 = vcmask 31744  }
   0x3   :  { %v1232_v11 = vpack.c.bf16 %v208_v10, %v207_v9  ;;  %v132_v12 = vld [vmem:[%s1556_s4] sm:$0xff]  ;;  %v1050_v22 = vld [vmem:[%s1554_s6 + $0x28] sm:$0xff]  ;;  %v1051_v26 = vld [vmem:[%s1554_s6 + $0x30] sm:$0xff] }
   0x4   :  { %v1226_v14 = vpack.c.bf16 %v133_v13, %v132_v12  ;;  %v57_v15 = vld [vmem:[%s1557_s3] sm:$0xff]  ;;  %v1052_v27 = vld [vmem:[%s1554_s6 + $0x38] sm:$0xff]  ;;  %v584_v33 = vld [vmem:[%s1560_s10 + $0x8] sm:$0xff] }
   0x5   :  { %v1049_v21 = vld [vmem:[%s1554_s6 + $0x20] sm:$0xff]  ;;  %v1238_v30 = vpack.c.bf16 %v1052_v27, %v1051_v26  ;;  %v511_v38 = vld [vmem:[%s1561_s8 + $0x8] sm:$0xff]  ;;  %v585_v42 = vld [vmem:[%s1560_s10 + $0x10] sm:$0xff] }
   0x6   :  { %1227 = vmatpush3.bf16.msra.mxu1 %v1226_v14  ;;  %v1420_v23 = vld [vmem:[%s1558_s0] sm:$0xff]  ;;  %v1235_v24 = vpack.c.bf16 %v1050_v22, %v1049_v21  ;;  %v586_v43 = vld [vmem:[%s1560_s10 + $0x18] sm:$0xff]  ;;  %v662_v46 = vld [vmem:[%s1562_s12 + $0x8] sm:$0xff] }
   0x7   :  { %1140 = vmatprep.subr.mxu1 %v1272_v3  ;;  %v134_v29 = vld [vmem:[%s1559_s5] sm:$0xff]  ;;  %v1247_v44 = vpack.c.bf16 %v586_v43, %v585_v42  ;;  %v663_v48 = vld [vmem:[%s1562_s12 + $0x10] sm:$0xff]  ;;  %v664_v49 = vld [vmem:[%s1562_s12 + $0x18] sm:$0xff] }
   0x8   :  { %v55_v1 = vld [vmem:[%s1572_s23] sm:$0xff]  ;;  %v56_v2 = vld [vmem:[%s1572_s23 + $0x8] sm:$0xff]  ;;  %v1253_v50 = vpack.c.bf16 %v664_v49, %v663_v48  ;;  %v1063_v5 = vld [vmem:[%s1562_s12 + $0x38] sm:$0xff] }
   0x9   :  { %v1223_v4 = vpack.c.bf16 %v56_v2, %v55_v1  ;;  %1127 = vmatmul.mubr.msk.f32.vlgmr.msra.gmra.mrb[0].mxu1 %vm58_vm1, %v1379_v7  ;;  %v583_v32 = vld [vmem:[%s1560_s10] sm:$0xff]  ;;  %v1053_v53 = vld [vmem:[%s1563_s7 + $0x8] sm:$0xff]  ;;  %v964_v21 = vld [vmem:[%s1566_s14 + $0x18] sm:$0xff] }
   0xa   :  { %1142 = vmatprep.mubr.msk.f32.mxu1 %vm1271_vm0, %v1272_v3  ;;  %v1244_v34 = vpack.c.bf16 %v584_v33, %v583_v32  ;;  %v510_v37 = vld [vmem:[%s1561_s8] sm:$0xff]  ;;  %v1061_v59 = vld [vmem:[%s1562_s12 + $0x28] sm:$0xff] }
   0xb   :  { %1224 = vmatpush3.bf16.msra.mxu0 %v1223_v4  ;;  %v1241_v39 = vpack.c.bf16 %v511_v38, %v510_v37  ;;  %v661_v45 = vld [vmem:[%s1562_s12] sm:$0xff]  ;;  %v1062_v4 = vld [vmem:[%s1562_s12 + $0x30] sm:$0xff]  ;;  %v962_v14 = vld [vmem:[%s1566_s14 + $0x8] sm:$0xff] }
   0xc   :  { %1228 = vmatprep.subr.bf16.mxu0 %v1270_v0  ;;  %v1250_v47 = vpack.c.bf16 %v662_v46, %v661_v45  ;;  %v209_v51 = vld [vmem:[%s1563_s7] sm:$0xff]  ;;  %v1259_v6 = vpack.c.bf16 %v1063_v5, %v1062_v4 }
   0xd   :  { %v1060_v58 = vld [vmem:[%s1562_s12 + $0x20] sm:$0xff] }
   0xe   :  { %1120 = vmatmul.mubr.msk.f32.vlgmr.msra.gmra.mrb[0].mxu0 %vm58_vm1, %v1379_v7  ;;  %v512_v60 = vld [vmem:[%s1564_s9] sm:$0xff]  ;;  %v1256_v63 = vpack.c.bf16 %v1061_v59, %v1060_v58 }
   0xf   :  { %1230 = vmatpush3.bf16.msra.mxu0 %v1229_v8  ;;  %1137 = vmatprep.mubr.msk.f32.mxu0 %vm1271_vm0, %v1272_v3  ;;  %v961_v13 = vld [vmem:[%s1566_s14] sm:$0xff] }
  0x10   :  { %1231 = vmatprep.subr.bf16.mxu0 %v1270_v0 }
  0x13   :  { %1233 = vmatpush3.bf16.msra.mxu0 %v1232_v11 }
  0x14   :  { %1156 = vmatprep.subr.mxu0 %v1272_v3 }
  0xdc   :  { %v201_v19 = vpop.f32.mrb[0].mxu1 }
  0xdd   :  { %v1128_v20 = vpop.f32.mrb[1].mxu1  ;;  %v202_v31 = vadd.f32 %v201_v19, %v134_v29  ;;  %v965_v29 = vld [vmem:[%s1568_s15] sm:$0xff] }
  0xde   :  { %v963_v20 = vld [vmem:[%s1566_s14 + $0x10] sm:$0xff] }
  0xdf   :  { %v1265_v22 = vpack.c.bf16 %v964_v21, %v963_v20 }
  0xe1   :  { %v128_v16 = vpop.f32.mrb[0].mxu0 }
  0xe2   :  { %v129_v17 = vadd.f32 %v128_v16, %v57_v15  ;;  %v1121_v18 = vpop.f32.mrb[1].mxu0  ;;  %v1262_v15 = vpack.c.bf16 %v962_v14, %v961_v13 }
  0xe4   :  { %1138 = vmatmul.mubr.msk.f32.vlgmr.msra.gmra.mrb[2].mxu0 %vm210_vm2, %v129_v17 }
  0xe5   :  { %1158 = vmatprep.mubr.msk.f32.mxu0 %vm1271_vm0, %v1272_v3 }
 0x1b7   :  { %v280_v25 = vpop.f32.mrb[2].mxu0 }
 0x1b8   :  { %v1139_v28 = vpop.f32.mrb[3].mxu0  ;;  %1141 = vmatpush3.msra.mxu1 %v280_v25 }
 0x1b9   :  { %1143 = vmatmul.mubr.msk.f32.vlgmr.msra.gmra.mrb[2].mxu1 %vm284_vm3, %v1420_v23  ;;  %1234 = vmatprep.subr.bf16.mxu1 %v1270_v0 }
 0x1ba   :  { %1236 = vmatpush3.bf16.msra.mxu1 %v1235_v24  ;;  %1153 = vmatprep.mubr.msk.f32.mxu1 %vm1271_vm0, %v1272_v3 }
 0x1bb   :  { %1237 = vmatprep.subr.bf16.mxu1 %v1270_v0 }
 0x1be   :  { %1239 = vmatpush3.bf16.msra.mxu1 %v1238_v30 }
 0x1bf   :  { %1243 = vmatprep.subr.bf16.mxu1 %v1270_v0 }
 0x1c1   :  { %1154 = vmatmul.mubr.msk.f32.vlgmr.msra.gmra.mrb[4].mxu1 %vm210_vm2, %v202_v31 }
 0x1c2   :  { %1176 = vmatprep.mubr.msk.f32.mxu1 %vm1271_vm0, %v1272_v3  ;;  %1245 = vmatpush3.bf16.msra.mxu1 %v1244_v34 }
 0x1c3   :  { %1246 = vmatprep.subr.bf16.mxu1 %v1270_v0 }
 0x1c6   :  { %1248 = vmatpush3.bf16.msra.mxu1 %v1247_v44 }
 0x1c7   :  { %1190 = vmatprep.subr.mxu1 %v1272_v3 }
 0x28c   :  { %v354_v35 = vpop.f32.mrb[2].mxu1 }
 0x28d   :  { %v1144_v36 = vpop.f32.mrb[3].mxu1  ;;  %v355_v52 = vadd.f32 %v354_v35, %v209_v51 }
 0x28f   :  { %v508_v55 = vadd.f32 %v355_v52, %v355_v52 }
 0x294   :  { %v434_v40 = vpop.f32.mrb[4].mxu1 }
 0x295   :  { %v1155_v41 = vpop.f32.mrb[5].mxu1  ;;  %1157 = vmatpush3.msra.mxu0 %v434_v40 }
 0x296   :  { %1159 = vmatmul.mubr.msk.f32.vlgmr.msra.gmra.mrb[4].mxu0 %vm284_vm3, %v1420_v23  ;;  %1240 = vmatprep.subr.bf16.mxu0 %v1270_v0 }
 0x297   :  { %1242 = vmatpush3.bf16.msra.mxu0 %v1241_v39  ;;  %1165 = vmatprep.mubr.msk.f32.mxu0 %vm1271_vm0, %v1272_v3 }
 0x298   :  { %1249 = vmatprep.subr.bf16.mxu0 %v1270_v0 }
 0x29a   :  { %1166 = vmatmul.mubr.msk.f32.vlgmr.msra.gmra.mrb[6].mxu0 %vm58_vm1, %v1379_v7  ;;  %v587_v7 = vld [vmem:[%s1565_s11] sm:$0xff] }
 0x29b   :  { %1187 = vmatprep.mubr.msk.f32.mxu0 %vm1271_vm0, %v1272_v3  ;;  %1251 = vmatpush3.bf16.msra.mxu0 %v1250_v47 }
 0x29c   :  { %1252 = vmatprep.subr.bf16.mxu0 %v1270_v0 }
 0x29f   :  { %1254 = vmatpush3.bf16.msra.mxu0 %v1253_v50 }
 0x2a0   :  { %1255 = vmatprep.subr.bf16.mxu0 %v1270_v0 }
 0x369   :  { %v504_v54 = vpop.f32.mrb[4].mxu0 }
 0x36a   :  { %v505_v56 = vadd.f32 %v1053_v53, %v504_v54  ;;  %v1160_v57 = vpop.f32.mrb[5].mxu0 }
 0x36c   :  { %v509_v61 = vadd.f32 %v508_v55, %v505_v56 }
 0x36d   :  { %v579_v62 = vpop.f32.mrb[6].mxu0 }
 0x36e   :  { %1177 = vmatmul.mubr.msk.f32.vlgmr.msra.gmra.mrb[6].mxu1 %vm210_vm2, %v509_v61  ;;  %v580_v1 = vadd.f32 %v579_v62, %v512_v60  ;;  %v1167_v2 = vpop.f32.mrb[7].mxu0 }
 0x36f   :  { %1192 = vmatprep.mubr.msk.f32.mxu1 %vm1271_vm0, %v1272_v3 }
 0x370   :  { %1188 = vmatmul.mubr.msk.f32.vlgmr.msra.gmra.mrb[8].mxu0 %vm210_vm2, %v580_v1 }
 0x371   :  { %1257 = vmatpush3.bf16.msra.mxu0 %v1256_v63  ;;  %1203 = vmatprep.mubr.msk.f32.mxu0 %vm1271_vm0, %v1272_v3 }
 0x372   :  { %1258 = vmatprep.subr.bf16.mxu0 %v1270_v0 }
 0x375   :  { %1260 = vmatpush3.bf16.msra.mxu0 %v1259_v6 }
 0x441   :  { %v657_v8 = vpop.f32.mrb[6].mxu1 }
 0x442   :  { %v658_v9 = vadd.f32 %v657_v8, %v587_v7  ;;  %v1178_v10 = vpop.f32.mrb[7].mxu1 }
 0x443   :  { %v735_v11 = vpop.f32.mrb[8].mxu0 }
 0x444   :  { %1204 = vmatmul.mubr.msk.f32.vlgmr.msra.gmra.mrb[10].mxu0 %vm210_vm2, %v658_v9  ;;  %v1189_v12 = vpop.f32.mrb[9].mxu0  ;;  %1191 = vmatpush3.msra.mxu1 %v735_v11 }
 0x445   :  { %1193 = vmatmul.mubr.msk.f32.vlgmr.msra.gmra.mrb[8].mxu1 %vm284_vm3, %v1420_v23  ;;  %1206 = vmatprep.subr.mxu1 %v1272_v3 }
 0x446   :  { %1208 = vmatprep.mubr.msk.f32.mxu1 %vm1271_vm0, %v1272_v3 }
 0x517   :  { %v885_v16 = vpop.f32.mrb[10].mxu0 }
 0x518   :  { %v1205_v17 = vpop.f32.mrb[11].mxu0  ;;  %1207 = vmatpush3.msra.mxu1 %v885_v16  ;;  %v805_v18 = vpop.f32.mrb[8].mxu1 }
 0x519   :  { %1209 = vmatmul.mubr.msk.f32.vlgmr.msra.gmra.mrb[10].mxu1 %vm284_vm3, %v1420_v23  ;;  %1261 = vmatprep.subr.bf16.mxu1 %v1270_v0  ;;  %v1194_v19 = vpop.f32.mrb[9].mxu1  ;;  %v665_v23 = vld [vmem:[%s1567_s13] sm:$0xff] }
 0x51a   :  { %1263 = vmatpush3.bf16.msra.mxu1 %v1262_v15  ;;  %1219 = vmatprep.mubr.msk.f32.mxu1 %vm1271_vm0, %v1272_v3  ;;  %v806_v24 = vadd.f32 %v805_v18, %v665_v23  ;;  %v1064_v3 = vld [vmem:[%s1567_s13 + $0x8] sm:$0xff] }
 0x51b   :  { %1264 = vmatprep.subr.bf16.mxu1 %v1270_v0 }
 0x51c   :  { %v959_v25 = vadd.f32 %v806_v24, %v806_v24 }
 0x51e   :  { %1266 = vmatpush3.bf16.msra.mxu1 %v1265_v22 }
 0x5ec   :  { %v955_v0 = vpop.f32.mrb[10].mxu1 }
 0x5ed   :  { %v956_v26 = vadd.f32 %v1064_v3, %v955_v0  ;;  %v1210_v27 = vpop.f32.mrb[11].mxu1 }
 0x5ef   :  { %v960_v28 = vadd.f32 %v959_v25, %v956_v26 }
 0x5f1   :  { %1220 = vmatmul.mubr.msk.f32.vlgmr.msra.gmra.mrb[12].mxu1 %vm210_vm2, %v960_v28 }
 0x6c4   :  { %v1035_v30 = vpop.f32.mrb[12].mxu1 }
 0x6c5   :  { %v1036_v31 = vadd.f32 %v1035_v30, %v965_v29  ;;  %v1221_v32 = vpop.f32.mrb[13].mxu1 }
 0x6c7   :  { %1040 = vst.msk [vmem:[%s1569_s16] sm:$0xff] %vm1039_vm4, %v1036_v31 }

</bundles_post_ra>
